<compile_context>
chip_gen: v7x
topology: tpu7x:2x2x1
jax: 0.10.0
libtpu: 0.0.40
codegen_flags: <defaults>
</compile_context>

<pallas_src>
import jax
import jax.numpy as jnp
from jax.experimental import pallas as pl
from jax.experimental.pallas import tpu as pltpu


# ----------------------------- kernel -----------------------------

def _mlp_kernel(x_ref, w1a_ref, w1g_ref, w2_ref, b2_ref, o_ref, acc_ref):
    # x_ref:   (tm, in_p)        native dtype
    # w1a_ref: (in_p, t_hid)     native dtype  ("a" half of W1, hidden-tiled)
    # w1g_ref: (in_p, t_hid)     native dtype  ("gate" half of W1, hidden-tiled)
    # w2_ref:  (t_hid, out_p)    native dtype  (scale pre-folded, hidden-tiled)
    # b2_ref:  (1, out_p)        native dtype  (scale pre-folded)
    # o_ref:   (tm, out_p)
    # acc_ref: (tm, out_p)       f32 scratch accumulator over the hidden grid axis
    h = pl.program_id(1)

    @pl.when(h == 0)
    def _init():
        acc_ref[...] = jnp.zeros_like(acc_ref)

    x = x_ref[...]
    # MXU matmuls with native-dtype operands, f32 accumulation.
    a = jnp.dot(x, w1a_ref[...], preferred_element_type=jnp.float32)   # (tm, t_hid) f32
    g = jnp.dot(x, w1g_ref[...], preferred_element_type=jnp.float32)   # (tm, t_hid) f32

    # SwiGLU gating in f32 (EUP sigmoid + VPU multiplies).
    act = a * (g * jax.nn.sigmoid(g))
    acc_ref[...] += jnp.dot(act.astype(w2_ref.dtype), w2_ref[...],
                            preferred_element_type=jnp.float32)

    @pl.when(h == pl.num_programs(1) - 1)
    def _store():
        o_ref[...] = (acc_ref[...] + b2_ref[...].astype(jnp.float32)).astype(o_ref.dtype)


# ----------------------------- helpers -----------------------------

def _round_up(v, m):
    return (v + m - 1) // m * m


def _pad2(x, rows, cols):
    pr, pc = rows - x.shape[0], cols - x.shape[1]
    if pr == 0 and pc == 0:
        return x
    return jnp.pad(x, ((0, pr), (0, pc)))


def _vmem_capacity_bytes():
    try:
        return int(pltpu.get_tpu_info().vmem_capacity_bytes)
    except Exception:
        return 64 << 20   # conservative fallback (v7x per-core VMEM)


def _lane_multiple():
    # v6e / v7x MXUs are 2x256x256; v5e and older are 128x128.
    try:
        kind = jax.devices()[0].device_kind.lower()
    except Exception:
        return 128
    return 256 if ("v6" in kind or "v7" in kind) else 128


def _sublane_multiple(dtype):
    # Sub-32-bit dtypes pack along sublanes; keep the row tile a full packed multiple.
    return 8 * max(1, 4 // jnp.dtype(dtype).itemsize)


# ----------------------------- wrapper -----------------------------

def mlp_forward(x, w1, w2, b2, *, scale=None, tm=None, t_hid_target=1024,
                compute_dtype=None):
    """x: (..., in_fe); w1: (in_fe, 2*hidden) (pre-transposed vs torch w1.weight);
       w2: (hidden, out_dim); b2: (out_dim,)."""
    in_fe, two_h = w1.shape
    hidden, out_dim = w2.shape
    assert two_h == 2 * hidden

    orig_shape = x.shape
    out_dtype = x.dtype
    xm = x.reshape(-1, in_fe)
    M = xm.shape[0]

    # Split W1 into the "a" half and the "gate" half (matches torch chunk(2, dim=-1)
    # on h = x @ W1^T: first half -> a, second half -> gate).
    w1a, w1g = w1[:, :hidden], w1[:, hidden:]

    # Fold scale into the second projection in f32 (then cast once) -> no per-tile epilogue
    # multiply and no low-precision scale rounding. Truthiness matches torch `if self.scale:`.
    if scale:
        s = jnp.float32(scale)
        w2 = (w2.astype(jnp.float32) * s).astype(w2.dtype)
        b2 = (b2.astype(jnp.float32) * s).astype(b2.dtype)

    # Optional low-precision MXU operands (f32 accumulation stays in-kernel).
    if compute_dtype is not None:
        xm = xm.astype(compute_dtype)
        w1a = w1a.astype(compute_dtype)
        w1g = w1g.astype(compute_dtype)
        w2 = w2.astype(compute_dtype)

    cap = _vmem_capacity_bytes()
    lane = _lane_multiple()
    sub = _sublane_multiple(xm.dtype)

    # Lane-dense padding of the minor dims (unmasked vld/vst, full MXU tiles).
    in_p = _round_up(in_fe, lane)
    out_p = _round_up(out_dim, lane)

    # Hidden-dim tiling: bound f32 intermediates to (tm, t_hid) and weight tiles to
    # (in_p, t_hid) / (t_hid, out_p).
    hid_base = _round_up(hidden, lane)
    n_h = pl.cdiv(hid_base, t_hid_target)
    t_hid = _round_up(pl.cdiv(hid_base, n_h), lane)
    hid_p = t_hid * n_h

    # Row tile: generation-aware default, dtype-aware sublane rounding, never bigger than
    # (sublane-rounded) M, shrunk further if the VMEM estimate blows the budget.
    if tm is None:
        tm = 256 if cap <= (64 << 20) else 512
    tm_eff = _round_up(min(tm, _round_up(M, sub)), sub)

    x_bytes = jnp.dtype(xm.dtype).itemsize
    w_bytes = jnp.dtype(w2.dtype).itemsize
    o_bytes = jnp.dtype(out_dtype).itemsize

    def est_vmem(tm_, grid_m_):
        x_buf = (1 if grid_m_ == 1 else 2) * tm_ * in_p * x_bytes
        w_buf = (1 if n_h == 1 else 2) * (2 * in_p * t_hid + t_hid * out_p) * w_bytes
        b_buf = out_p * w_bytes
        o_buf = 2 * tm_ * out_p * o_bytes
        acc = tm_ * out_p * 4
        inter = 3 * tm_ * t_hid * 4          # a, g, act f32 temporaries
        return x_buf + w_buf + b_buf + o_buf + acc + inter

    budget = int(cap * 0.7)
    while tm_eff > sub and est_vmem(tm_eff, pl.cdiv(M, tm_eff)) > budget:
        tm_eff = max(sub, _round_up(tm_eff // 2, sub))

    # No host-side row padding: Pallas clips the partial last M block (output rows are
    # independent, so garbage rows only land in clipped output rows).
    grid_m = pl.cdiv(M, tm_eff)
    vmem_limit = int(min(cap * 0.9, max(est_vmem(tm_eff, grid_m) * 1.5, 32 << 20)))

    xm_p = _pad2(xm, M, in_p)
    w1a_p = _pad2(w1a, in_p, hid_p)
    w1g_p = _pad2(w1g, in_p, hid_p)
    w2_p = _pad2(w2, hid_p, out_p)
    b2_p = _pad2(b2.reshape(1, out_dim), 1, out_p)

    def build(single_buffer_ok):
        def spec(shape, index_map, constant):
            if single_buffer_ok and constant:
                # Constant block index across the whole grid -> no double-buffering.
                return pl.BlockSpec(shape, index_map, pipeline_mode=pl.Buffered(1))
            return pl.BlockSpec(shape, index_map)

        return pl.pallas_call(
            _mlp_kernel,
            out_shape=jax.ShapeDtypeStruct((M, out_p), out_dtype),
            grid_spec=pltpu.PrefetchScalarGridSpec(
                num_scalar_prefetch=0,
                grid=(grid_m, n_h),
                in_specs=[
                    spec((tm_eff, in_p), lambda i, h: (i, 0), grid_m == 1),   # x tile
                    spec((in_p, t_hid), lambda i, h: (0, h), n_h == 1),       # W1 "a"
                    spec((in_p, t_hid), lambda i, h: (0, h), n_h == 1),       # W1 "gate"
                    spec((t_hid, out_p), lambda i, h: (h, 0), n_h == 1),      # W2
                    spec((1, out_p), lambda i, h: (0, 0), True),              # b2
                ],
                out_specs=pl.BlockSpec((tm_eff, out_p), lambda i, h: (i, 0)),
                scratch_shapes=[pltpu.VMEM((tm_eff, out_p), jnp.float32)],
            ),
            compiler_params=pltpu.CompilerParams(
                # M axis parallel (megacore split only pays off when grid_m > 1);
                # hidden reduction axis arbitrary and innermost.
                dimension_semantics=("parallel", "arbitrary"),
                vmem_limit_bytes=vmem_limit,
            ),
        )

    try:
        out = build(True)(xm_p, w1a_p, w1g_p, w2_p, b2_p)
    except Exception:
        # Older JAX may reject pipeline_mode=pl.Buffered(1); fall back to default buffering.
        out = build(False)(xm_p, w1a_p, w1g_p, w2_p, b2_p)

    out = out[:, :out_dim]
    return out.reshape(*orig_shape[:-1], out_dim)


# ----------------------------- reference & demo -----------------------------

def _trunc_normal(key, shape, std=0.02, lo=-2.0, hi=2.0, dtype=jnp.float32):
    # matches nn.init.trunc_normal_(std=0.02, a=-2.0, b=2.0)
    return jax.random.truncated_normal(key, lo / std, hi / std, shape, dtype) * std


def reference_mlp(x, w1, w2, b2, scale=None):
    h = jnp.einsum("...i,ij->...j", x.astype(jnp.float32), w1.astype(jnp.float32))
    hidden = w2.shape[0]
    a, g = h[..., :hidden], h[..., hidden:]
    act = a * (g * jax.nn.sigmoid(g))
    y = jnp.einsum("...h,ho->...o", act, w2.astype(jnp.float32)) + b2.astype(jnp.float32)
    if scale:
        y = y * scale
    return y.astype(x.dtype)


if __name__ == "__main__":
    key = jax.random.PRNGKey(0)
    k_x, k_w1, k_w2, k_b2 = jax.random.split(key, 4)

    batch, seq = 2, 8
    in_fe, hidden, out_dim = 32, 32, 32
    scale = 0.5

    x = jax.random.normal(k_x, (batch, seq, in_fe), dtype=jnp.float32)
    # PyTorch weight shapes: w1.weight [2*hidden, in_fe], w2.weight [out_dim, hidden].
    # Stored pre-transposed for row-major matmul.
    w1 = _trunc_normal(k_w1, (in_fe, 2 * hidden))
    w2 = _trunc_normal(k_w2, (hidden, out_dim))
    b2 = jax.random.normal(k_b2, (out_dim,), dtype=jnp.float32) * 0.01

    y_ref = reference_mlp(x, w1, w2, b2, scale=scale)

    # f32 path (exact-ish vs reference).
    y = mlp_forward(x, w1, w2, b2, scale=scale)
    jax.block_until_ready(y)
    assert y.shape == (batch, seq, out_dim)
    assert jnp.allclose(y, y_ref, atol=1e-5, rtol=1e-5), "f32 mismatch vs reference"

    # bf16 MXU-operand path (f32 accumulation) — looser tolerance.
    y_bf16 = mlp_forward(x, w1, w2, b2, scale=scale, compute_dtype=jnp.bfloat16)
    jax.block_until_ready(y_bf16)
    assert y_bf16.shape == (batch, seq, out_dim)
    assert jnp.allclose(y_bf16, y_ref, atol=2e-2, rtol=2e-2), "bf16 mismatch vs reference"

    print("KERNEL_OK")
</pallas_src>

<mosaic_0001>
module attributes {stable_mosaic.version = 11 : i64} {
  func.func @_mlp_kernel(%arg0: i32, %arg1: i32, %arg2: memref<16x128xf32, #tpu.memory_space<vmem>>, %arg3: memref<128x128xf32, #tpu.memory_space<vmem>>, %arg4: memref<128x128xf32, #tpu.memory_space<vmem>>, %arg5: memref<128x128xf32, #tpu.memory_space<vmem>>, %arg6: memref<1x128xf32, #tpu.memory_space<vmem>>, %arg7: memref<16x128xf32, #tpu.memory_space<vmem>>, %arg8: memref<16x128xf32, #tpu.memory_space<vmem>>) attributes {dimension_semantics = [#tpu.dimension_semantics<parallel>, #tpu.dimension_semantics<arbitrary>], iteration_bounds = array<i64: 1, 1>, scalar_prefetch = 0 : i64, scratch_operands = 1 : i64, tpu.core_type = #tpu.core_type<tc>, window_params = [{pipeline_mode = #tpu.pipeline_mode<synchronous>, transform_indices = @transform_0, window_bounds = array<i64: 16, 128>}, {pipeline_mode = #tpu.pipeline_mode<synchronous>, transform_indices = @transform_1, window_bounds = array<i64: 128, 128>}, {pipeline_mode = #tpu.pipeline_mode<synchronous>, transform_indices = @transform_2, window_bounds = array<i64: 128, 128>}, {pipeline_mode = #tpu.pipeline_mode<synchronous>, transform_indices = @transform_3, window_bounds = array<i64: 128, 128>}, {pipeline_mode = #tpu.pipeline_mode<synchronous>, transform_indices = @transform_4, window_bounds = array<i64: 1, 128>}, {transform_indices = @transform_5, window_bounds = array<i64: 16, 128>}]} {
    %c0_i32 = arith.constant 0 : i32
    %0 = arith.cmpi eq, %arg1, %c0_i32 : i32
    %1 = arith.extui %0 : i1 to i32
    %c0_i32_0 = arith.constant 0 : i32
    %2 = arith.cmpi ne, %1, %c0_i32_0 : i32
    scf.if %2 {
      %cst_17 = arith.constant 0.000000e+00 : f32
      %23 = vector.broadcast %cst_17 : f32 to vector<16x128xf32>
      %c0_18 = arith.constant 0 : index
      %c0_19 = arith.constant 0 : index
      %24 = vector.load %arg8[%c0_18, %c0_19] : memref<16x128xf32, #tpu.memory_space<vmem>>, vector<16x128xf32>
      tpu.vector_store %arg8[%c0_18, %c0_19], %23 {strides = array<i32>} : memref<16x128xf32, #tpu.memory_space<vmem>>, vector<16x128xf32>,
    } else {
    }
    %c0 = arith.constant 0 : index
    %c0_1 = arith.constant 0 : index
    %3 = vector.load %arg2[%c0, %c0_1] : memref<16x128xf32, #tpu.memory_space<vmem>>, vector<16x128xf32>
    %c0_2 = arith.constant 0 : index
    %c0_3 = arith.constant 0 : index
    %4 = vector.load %arg3[%c0_2, %c0_3] : memref<128x128xf32, #tpu.memory_space<vmem>>, vector<128x128xf32>
    %cst = arith.constant dense<0.000000e+00> : vector<16x128xf32>
    %5 = tpu.matmul %3, %4, %cst {dimension_numbers = #tpu.dot_dimension_numbers<[1], [0], [0], [1], [0, 0, 1, 1], [], []>} : vector<16x128xf32>, vector<128x128xf32>, vector<16x128xf32> -> vector<16x128xf32>
    %c0_4 = arith.constant 0 : index
    %c0_5 = arith.constant 0 : index
    %6 = vector.load %arg4[%c0_4, %c0_5] : memref<128x128xf32, #tpu.memory_space<vmem>>, vector<128x128xf32>
    %cst_6 = arith.constant dense<0.000000e+00> : vector<16x128xf32>
    %7 = tpu.matmul %3, %6, %cst_6 {dimension_numbers = #tpu.dot_dimension_numbers<[1], [0], [0], [1], [0, 0, 1, 1], [], []>} : vector<16x128xf32>, vector<128x128xf32>, vector<16x128xf32> -> vector<16x128xf32>
    %8 = arith.negf %7 : vector<16x128xf32>
    %9 = math.exp %8 : vector<16x128xf32>
    %cst_7 = arith.constant 1.000000e+00 : f32
    %10 = vector.broadcast %cst_7 : f32 to vector<16x128xf32>
    %11 = arith.addf %10, %9 : vector<16x128xf32>
    %12 = arith.divf %10, %11 : vector<16x128xf32>
    %13 = arith.mulf %7, %12 : vector<16x128xf32>
    %14 = arith.mulf %5, %13 : vector<16x128xf32>
    %c0_8 = arith.constant 0 : index
    %c0_9 = arith.constant 0 : index
    %15 = vector.load %arg8[%c0_8, %c0_9] : memref<16x128xf32, #tpu.memory_space<vmem>>, vector<16x128xf32>
    %c0_10 = arith.constant 0 : index
    %c0_11 = arith.constant 0 : index
    %16 = vector.load %arg5[%c0_10, %c0_11] : memref<128x128xf32, #tpu.memory_space<vmem>>, vector<128x128xf32>
    %cst_12 = arith.constant dense<0.000000e+00> : vector<16x128xf32>
    %17 = tpu.matmul %14, %16, %cst_12 {dimension_numbers = #tpu.dot_dimension_numbers<[1], [0], [0], [1], [0, 0, 1, 1], [], []>} : vector<16x128xf32>, vector<128x128xf32>, vector<16x128xf32> -> vector<16x128xf32>
    %18 = arith.addf %15, %17 : vector<16x128xf32>
    %c0_13 = arith.constant 0 : index
    %c0_14 = arith.constant 0 : index
    %19 = vector.load %arg8[%c0_13, %c0_14] : memref<16x128xf32, #tpu.memory_space<vmem>>, vector<16x128xf32>
    tpu.vector_store %arg8[%c0_13, %c0_14], %18 {strides = array<i32>} : memref<16x128xf32, #tpu.memory_space<vmem>>, vector<16x128xf32>,
    %c0_i32_15 = arith.constant 0 : i32
    %20 = arith.cmpi eq, %arg1, %c0_i32_15 : i32
    %21 = arith.extui %20 : i1 to i32
    %c0_i32_16 = arith.constant 0 : i32
    %22 = arith.cmpi ne, %21, %c0_i32_16 : i32
    scf.if %22 {
      %c0_17 = arith.constant 0 : index
      %c0_18 = arith.constant 0 : index
      %23 = vector.load %arg8[%c0_17, %c0_18] : memref<16x128xf32, #tpu.memory_space<vmem>>, vector<16x128xf32>
      %c0_19 = arith.constant 0 : index
      %c0_20 = arith.constant 0 : index
      %24 = vector.load %arg6[%c0_19, %c0_20] : memref<1x128xf32, #tpu.memory_space<vmem>>, vector<1x128xf32>
      %25 = vector.broadcast %24 : vector<1x128xf32> to vector<16x128xf32>
      %26 = arith.addf %23, %25 : vector<16x128xf32>
      %c0_21 = arith.constant 0 : index
      %c0_22 = arith.constant 0 : index
      %27 = vector.load %arg7[%c0_21, %c0_22] : memref<16x128xf32, #tpu.memory_space<vmem>>, vector<16x128xf32>
      tpu.vector_store %arg7[%c0_21, %c0_22], %26 {strides = array<i32>} : memref<16x128xf32, #tpu.memory_space<vmem>>, vector<16x128xf32>,
    } else {
    }
    return
  }
  func.func @transform_0(%arg0: i32, %arg1: i32) -> (i32, i32) {
    %c0_i32 = arith.constant 0 : i32
    %c0_i32_0 = arith.constant 0 : i32
    return %arg0, %c0_i32 : i32, i32
  }
  func.func @transform_1(%arg0: i32, %arg1: i32) -> (i32, i32) {
    %c0_i32 = arith.constant 0 : i32
    %c0_i32_0 = arith.constant 0 : i32
    return %c0_i32, %arg1 : i32, i32
  }
  func.func @transform_2(%arg0: i32, %arg1: i32) -> (i32, i32) {
    %c0_i32 = arith.constant 0 : i32
    %c0_i32_0 = arith.constant 0 : i32
    return %c0_i32, %arg1 : i32, i32
  }
  func.func @transform_3(%arg0: i32, %arg1: i32) -> (i32, i32) {
    %c0_i32 = arith.constant 0 : i32
    %c0_i32_0 = arith.constant 0 : i32
    return %arg1, %c0_i32 : i32, i32
  }
  func.func @transform_4(%arg0: i32, %arg1: i32) -> (i32, i32) {
    %c0_i32 = arith.constant 0 : i32
    %c0_i32_0 = arith.constant 0 : i32
    %c0_i32_1 = arith.constant 0 : i32
    return %c0_i32, %c0_i32_0 : i32, i32
  }
  func.func @transform_5(%arg0: i32, %arg1: i32) -> (i32, i32) {
    %c0_i32 = arith.constant 0 : i32
    %c0_i32_0 = arith.constant 0 : i32
    return %arg0, %c0_i32 : i32, i32
  }
}

module attributes {stable_mosaic.version = 11 : i64} {
  func.func @_mlp_kernel(%arg0: i32, %arg1: i32, %arg2: memref<16x128xf32, #tpu.memory_space<vmem>>, %arg3: memref<128x128xf32, #tpu.memory_space<vmem>>, %arg4: memref<128x128xf32, #tpu.memory_space<vmem>>, %arg5: memref<128x128xf32, #tpu.memory_space<vmem>>, %arg6: memref<1x128xf32, #tpu.memory_space<vmem>>, %arg7: memref<16x128xf32, #tpu.memory_space<vmem>>, %arg8: memref<16x128xf32, #tpu.memory_space<vmem>>) attributes {dimension_semantics = [#tpu.dimension_semantics<parallel>, #tpu.dimension_semantics<arbitrary>], iteration_bounds = array<i64: 1, 1>, scalar_prefetch = 0 : i64, scratch_operands = 1 : i64, tpu.core_type = #tpu.core_type<tc>, window_params = [{transform_indices = @transform_0, window_bounds = array<i64: 16, 128>}, {transform_indices = @transform_1, window_bounds = array<i64: 128, 128>}, {transform_indices = @transform_2, window_bounds = array<i64: 128, 128>}, {transform_indices = @transform_3, window_bounds = array<i64: 128, 128>}, {pipeline_mode = #tpu.pipeline_mode<synchronous>, transform_indices = @transform_4, window_bounds = array<i64: 1, 128>}, {transform_indices = @transform_5, window_bounds = array<i64: 16, 128>}]} {
    %c0_i32 = arith.constant 0 : i32
    %0 = arith.cmpi eq, %arg1, %c0_i32 : i32
    %1 = arith.extui %0 : i1 to i32
    %c0_i32_0 = arith.constant 0 : i32
    %2 = arith.cmpi ne, %1, %c0_i32_0 : i32
    scf.if %2 {
      %cst_17 = arith.constant 0.000000e+00 : f32
      %23 = vector.broadcast %cst_17 : f32 to vector<16x128xf32>
      %c0_18 = arith.constant 0 : index
      %c0_19 = arith.constant 0 : index
      %24 = vector.load %arg8[%c0_18, %c0_19] : memref<16x128xf32, #tpu.memory_space<vmem>>, vector<16x128xf32>
      tpu.vector_store %arg8[%c0_18, %c0_19], %23 {strides = array<i32>} : memref<16x128xf32, #tpu.memory_space<vmem>>, vector<16x128xf32>,
    } else {
    }
    %c0 = arith.constant 0 : index
    %c0_1 = arith.constant 0 : index
    %3 = vector.load %arg2[%c0, %c0_1] : memref<16x128xf32, #tpu.memory_space<vmem>>, vector<16x128xf32>
    %c0_2 = arith.constant 0 : index
    %c0_3 = arith.constant 0 : index
    %4 = vector.load %arg3[%c0_2, %c0_3] : memref<128x128xf32, #tpu.memory_space<vmem>>, vector<128x128xf32>
    %cst = arith.constant dense<0.000000e+00> : vector<16x128xf32>
    %5 = tpu.matmul %3, %4, %cst {dimension_numbers = #tpu.dot_dimension_numbers<[1], [0], [0], [1], [0, 0, 1, 1], [], []>} : vector<16x128xf32>, vector<128x128xf32>, vector<16x128xf32> -> vector<16x128xf32>
    %c0_4 = arith.constant 0 : index
    %c0_5 = arith.constant 0 : index
    %6 = vector.load %arg4[%c0_4, %c0_5] : memref<128x128xf32, #tpu.memory_space<vmem>>, vector<128x128xf32>
    %cst_6 = arith.constant dense<0.000000e+00> : vector<16x128xf32>
    %7 = tpu.matmul %3, %6, %cst_6 {dimension_numbers = #tpu.dot_dimension_numbers<[1], [0], [0], [1], [0, 0, 1, 1], [], []>} : vector<16x128xf32>, vector<128x128xf32>, vector<16x128xf32> -> vector<16x128xf32>
    %8 = arith.negf %7 : vector<16x128xf32>
    %9 = math.exp %8 : vector<16x128xf32>
    %cst_7 = arith.constant 1.000000e+00 : f32
    %10 = vector.broadcast %cst_7 : f32 to vector<16x128xf32>
    %11 = arith.addf %10, %9 : vector<16x128xf32>
    %12 = arith.divf %10, %11 : vector<16x128xf32>
    %13 = arith.mulf %7, %12 : vector<16x128xf32>
    %14 = arith.mulf %5, %13 : vector<16x128xf32>
    %c0_8 = arith.constant 0 : index
    %c0_9 = arith.constant 0 : index
    %15 = vector.load %arg8[%c0_8, %c0_9] : memref<16x128xf32, #tpu.memory_space<vmem>>, vector<16x128xf32>
    %c0_10 = arith.constant 0 : index
    %c0_11 = arith.constant 0 : index
    %16 = vector.load %arg5[%c0_10, %c0_11] : memref<128x128xf32, #tpu.memory_space<vmem>>, vector<128x128xf32>
    %cst_12 = arith.constant dense<0.000000e+00> : vector<16x128xf32>
    %17 = tpu.matmul %14, %16, %cst_12 {dimension_numbers = #tpu.dot_dimension_numbers<[1], [0], [0], [1], [0, 0, 1, 1], [], []>} : vector<16x128xf32>, vector<128x128xf32>, vector<16x128xf32> -> vector<16x128xf32>
    %18 = arith.addf %15, %17 : vector<16x128xf32>
    %c0_13 = arith.constant 0 : index
    %c0_14 = arith.constant 0 : index
    %19 = vector.load %arg8[%c0_13, %c0_14] : memref<16x128xf32, #tpu.memory_space<vmem>>, vector<16x128xf32>
    tpu.vector_store %arg8[%c0_13, %c0_14], %18 {strides = array<i32>} : memref<16x128xf32, #tpu.memory_space<vmem>>, vector<16x128xf32>,
    %c0_i32_15 = arith.constant 0 : i32
    %20 = arith.cmpi eq, %arg1, %c0_i32_15 : i32
    %21 = arith.extui %20 : i1 to i32
    %c0_i32_16 = arith.constant 0 : i32
    %22 = arith.cmpi ne, %21, %c0_i32_16 : i32
    scf.if %22 {
      %c0_17 = arith.constant 0 : index
      %c0_18 = arith.constant 0 : index
      %23 = vector.load %arg8[%c0_17, %c0_18] : memref<16x128xf32, #tpu.memory_space<vmem>>, vector<16x128xf32>
      %c0_19 = arith.constant 0 : index
      %c0_20 = arith.constant 0 : index
      %24 = vector.load %arg6[%c0_19, %c0_20] : memref<1x128xf32, #tpu.memory_space<vmem>>, vector<1x128xf32>
      %25 = vector.broadcast %24 : vector<1x128xf32> to vector<16x128xf32>
      %26 = arith.addf %23, %25 : vector<16x128xf32>
      %c0_21 = arith.constant 0 : index
      %c0_22 = arith.constant 0 : index
      %27 = vector.load %arg7[%c0_21, %c0_22] : memref<16x128xf32, #tpu.memory_space<vmem>>, vector<16x128xf32>
      tpu.vector_store %arg7[%c0_21, %c0_22], %26 {strides = array<i32>} : memref<16x128xf32, #tpu.memory_space<vmem>>, vector<16x128xf32>,
    } else {
    }
    return
  }
  func.func @transform_0(%arg0: i32, %arg1: i32) -> (i32, i32) {
    %c0_i32 = arith.constant 0 : i32
    %c0_i32_0 = arith.constant 0 : i32
    return %arg0, %c0_i32 : i32, i32
  }
  func.func @transform_1(%arg0: i32, %arg1: i32) -> (i32, i32) {
    %c0_i32 = arith.constant 0 : i32
    %c0_i32_0 = arith.constant 0 : i32
    return %c0_i32, %arg1 : i32, i32
  }
  func.func @transform_2(%arg0: i32, %arg1: i32) -> (i32, i32) {
    %c0_i32 = arith.constant 0 : i32
    %c0_i32_0 = arith.constant 0 : i32
    return %c0_i32, %arg1 : i32, i32
  }
  func.func @transform_3(%arg0: i32, %arg1: i32) -> (i32, i32) {
    %c0_i32 = arith.constant 0 : i32
    %c0_i32_0 = arith.constant 0 : i32
    return %arg1, %c0_i32 : i32, i32
  }
  func.func @transform_4(%arg0: i32, %arg1: i32) -> (i32, i32) {
    %c0_i32 = arith.constant 0 : i32
    %c0_i32_0 = arith.constant 0 : i32
    %c0_i32_1 = arith.constant 0 : i32
    return %c0_i32, %c0_i32_0 : i32, i32
  }
  func.func @transform_5(%arg0: i32, %arg1: i32) -> (i32, i32) {
    %c0_i32 = arith.constant 0 : i32
    %c0_i32_0 = arith.constant 0 : i32
    return %arg0, %c0_i32 : i32, i32
  }
}

</mosaic_0001>

<bundles_post_ra>
// kernel: tpu_custom_call.1
= control target key start
LH: loop header
LB: loop body
LE: loop exit
PB: predicated region body
PF: predicated region fallthrough
CT: control target
= control target key end

     0   :  { %10 = vsyncpa [#allocation4], 0  ;;  %s934_s0 = inlined_call_operand.hbm [shape: f32[16,128], index: 0, kind: input, shape index: {}]   ;;  %s935_s1 = inlined_call_operand.hbm [shape: f32[128,128], index: 1, kind: input, shape index: {}]   ;;  %s936_s2 = inlined_call_operand.hbm [shape: f32[128,128], index: 2, kind: input, shape index: {}]   ;;  %s937_s3 = inlined_call_operand.hbm [shape: f32[128,128], index: 3, kind: input, shape index: {}]   ;;  %s938_s4 = inlined_call_operand.vmem [shape: f32[1,128], index: 4, kind: input, shape index: {}]   ;;  %s939_s5 = inlined_call_operand.hbm [shape: f32[16,128], index: 5, kind: output, shape index: {}]  }
   0x1   :  { %11 = vsyncpa [#allocation7], 0 }
   0x2   :  { %12 = vsyncpa [#allocation10], 0 }
   0x3   :  { %13 = vsyncpa [#allocation5], 0  ;;  %s805_s18 = smov [#allocation6]   ;;  %s806_s20 = smov [#allocation3]  }
   0x4   :  { %s31_s19 = sshll.u32 %s805_s18, 4  ;;  %s19_s21 = sshll.u32 %s806_s20, 4  ;;  %s32_s19 = int_to_ptr.vmem [resolvable:$true] %s31_s19  ;;  %s842_s21 = int_to_ptr.vmem [resolvable:$true] %s19_s21 }
   0x5   :  { %s687_s24 = scalar_lea.hbm %s935_s1, 2048 }
   0x6   :  { %p688_p0 = scmp.ne.s32.totalorder %s935_s1, %s687_s24  ;;  %p691_p1 = scmp.lt.u32.totalorder %s687_s24, %s935_s1 }
   0x8   :  { %p693_p2 = pnand %p691_p1, %p688_p0 }
   0xa   :  { %696 = shalt.err (!%p693_p2)
}
   0xb   :  { %s697_s29 = scalar_lea.vmem %s32_s19, 2048  ;;  %p702_p4 = scmp.lt.s32.totalorder %s32_s19, %s32_s19 }
   0xc   :  { %p698_p3 = scmp.ne.s32.totalorder %s32_s19, %s697_s29  ;;  %p703_p5 = scmp.lt.s32.totalorder %s697_s29, %s697_s29 }
   0xe   :  { %p704_p6 = por %p703_p5, %p702_p4 }
  0x10   :  { %p705_p7 = pnand %p704_p6, %p698_p3 }
  0x12   :  { %708 = shalt.err (!%p705_p7)
}
  0x13   :  { %s807_s30 = smov 128   ;;  %s808_s6 = smov 8  }
  0x14   :  { %37 = dma.hbm_to_vmem [thread:$0]  %s935_s1, 2048, %s32_s19, [#allocation7], %s807_s30, %s807_s30, %s808_s6  }
  0x15   :  { %s709_s11 = scalar_lea.hbm %s934_s0, 256 }
  0x16   :  { %p710_p8 = scmp.ne.s32.totalorder %s934_s0, %s709_s11  ;;  %p713_p9 = scmp.lt.u32.totalorder %s709_s11, %s934_s0 }
  0x18   :  { %p715_p10 = pnand %p713_p9, %p710_p8 }
  0x1a   :  { %718 = shalt.err (!%p715_p10)
}
  0x1b   :  { %s719_s16 = scalar_lea.vmem %s842_s21, 256  ;;  %p724_p12 = scmp.lt.s32.totalorder %s842_s21, %s842_s21 }
  0x1c   :  { %p720_p11 = scmp.ne.s32.totalorder %s842_s21, %s719_s16  ;;  %p725_p13 = scmp.lt.s32.totalorder %s719_s16, %s719_s16 }
  0x1e   :  { %p726_p0 = por %p725_p13, %p724_p12 }
  0x20   :  { %p727_p1 = pnand %p726_p0, %p720_p11 }
  0x22   :  { %730 = shalt.err (!%p727_p1)
}
  0x23   :  { %25 = dma.hbm_to_vmem [thread:$0]  %s934_s0, 256, %s842_s21, [#allocation4], %s807_s30, %s807_s30, %s808_s6  }
  0x24   :  { %s809_s18 = smov [#allocation8]   ;;  %s810_s20 = smov [#allocation9]  }
  0x25   :  { %s43_s19 = sshll.u32 %s809_s18, 4  ;;  %s55_s22 = sshll.u32 %s810_s20, 4  ;;  %s44_s19 = int_to_ptr.vmem [resolvable:$true] %s43_s19  ;;  %s879_s22 = int_to_ptr.vmem [resolvable:$true] %s55_s22 }
  0x26   :  { %s731_s25 = scalar_lea.hbm %s936_s2, 2048 }
  0x27   :  { %p732_p2 = scmp.ne.s32.totalorder %s936_s2, %s731_s25  ;;  %p735_p3 = scmp.lt.u32.totalorder %s731_s25, %s936_s2 }
  0x29   :  { %p737_p4 = pnand %p735_p3, %p732_p2 }
  0x2b   :  { %740 = shalt.err (!%p737_p4)
}
  0x2c   :  { %s741_s0 = scalar_lea.vmem %s44_s19, 2048  ;;  %p746_p6 = scmp.lt.s32.totalorder %s44_s19, %s44_s19 }
  0x2d   :  { %p742_p5 = scmp.ne.s32.totalorder %s44_s19, %s741_s0  ;;  %p747_p7 = scmp.lt.s32.totalorder %s741_s0, %s741_s0 }
  0x2f   :  { %p748_p8 = por %p747_p7, %p746_p6 }
  0x31   :  { %p749_p9 = pnand %p748_p8, %p742_p5 }
  0x33   :  { %752 = shalt.err (!%p749_p9)
}
  0x34   :  { %49 = dma.hbm_to_vmem [thread:$0]  %s936_s2, 2048, %s44_s19, [#allocation7], %s807_s30, %s807_s30, %s808_s6  }
  0x35   :  { %s753_s10 = scalar_lea.hbm %s937_s3, 2048 }
  0x36   :  { %p754_p10 = scmp.ne.s32.totalorder %s937_s3, %s753_s10  ;;  %p757_p11 = scmp.lt.u32.totalorder %s753_s10, %s937_s3 }
  0x38   :  { %p759_p12 = pnand %p757_p11, %p754_p10 }
  0x3a   :  { %762 = shalt.err (!%p759_p12)
}
  0x3b   :  { %s763_s15 = scalar_lea.vmem %s879_s22, 2048  ;;  %p768_p0 = scmp.lt.s32.totalorder %s879_s22, %s879_s22 }
  0x3c   :  { %p764_p13 = scmp.ne.s32.totalorder %s879_s22, %s763_s15  ;;  %p769_p1 = scmp.lt.s32.totalorder %s763_s15, %s763_s15 }
  0x3e   :  { %p770_p2 = por %p769_p1, %p768_p0 }
  0x40   :  { %p771_p3 = pnand %p770_p2, %p764_p13 }
  0x42   :  { %774 = shalt.err (!%p771_p3)
}
  0x43   :  { %61 = dma.hbm_to_vmem [thread:$0]  %s937_s3, 2048, %s879_s22, [#allocation10], %s807_s30, %s807_s30, %s808_s6  }
  0x44   :  { %797 = dma.done.wait [#allocation4], 256  }
  0x45   :  { %798 = vsyncadd [#allocation4], 4294967040 }
  0x46   :  { %799 = dma.done.wait [#allocation7], 4096  }
  0x47   :  { %800 = vsyncadd [#allocation7], 4294963200 }
  0x48   :  { %801 = dma.done.wait [#allocation10], 2048  }
  0x49   :  { %802 = vsyncadd [#allocation10], 4294965248  ;;  %v175_v0 = vld [vmem:[#allocation8] sm:$0xff]  ;;  %v176_v1 = vld [vmem:[#allocation8 + $0x8] sm:$0xff]  ;;  %s811_s17 = smov [#allocation11]  }
  0x4a   :  { %v177_v2 = vld [vmem:[#allocation8 + $0x10] sm:$0xff]  ;;  %v608_v3 = vpack.c.bf16 %v176_v1, %v175_v0  ;;  %v178_v4 = vld [vmem:[#allocation8 + $0x18] sm:$0xff]  ;;  %v179_v6 = vld [vmem:[#allocation8 + $0x20] sm:$0xff]  ;;  %s400_s18 = sshll.u32 %s811_s17, 4  ;;  %s401_s18 = int_to_ptr.vmem [resolvable:$true] %s400_s18 }
  0x4b   :  { %v612_v5 = vpack.c.bf16 %v178_v4, %v177_v2  ;;  %v180_v7 = vld [vmem:[#allocation8 + $0x28] sm:$0xff]  ;;  %v84_v8 = vld [vmem:[#allocation6] sm:$0xff]  ;;  %v181_v10 = vld [vmem:[#allocation8 + $0x30] sm:$0xff]  ;;  %s775_s19 = scalar_lea.vmem %s401_s18, 256  ;;  %p780_p5 = scmp.lt.s32.totalorder %s401_s18, %s401_s18 }
  0x4c   :  { %609 = vmatprep.subr.bf16.mxu1 %v608_v3  ;;  %v616_v9 = vpack.c.bf16 %v180_v7, %v179_v6  ;;  %v182_v11 = vld [vmem:[#allocation8 + $0x38] sm:$0xff]  ;;  %v85_v12 = vld [vmem:[#allocation6 + $0x8] sm:$0xff]  ;;  %v86_v14 = vld [vmem:[#allocation6 + $0x10] sm:$0xff]  ;;  %p776_p4 = scmp.ne.s32.totalorder %s401_s18, %s775_s19  ;;  %p781_p6 = scmp.lt.s32.totalorder %s775_s19, %s775_s19 }
  0x4d   :  { %611 = vmatpush3.bf16.msra.mxu1 %v608_v3  ;;  %v576_v13 = vpack.c.bf16 %v85_v12, %v84_v8  ;;  %v87_v15 = vld [vmem:[#allocation6 + $0x18] sm:$0xff]  ;;  %v82_v16 = vld [vmem:[#allocation3] sm:$0xff]  ;;  %v88_v18 = vld [vmem:[#allocation6 + $0x20] sm:$0xff]  ;;  %v620_v20 = vpack.c.bf16 %v182_v11, %v181_v10 }
  0x4e   :  { %613 = vmatprep.subr.bf16.mxu1 %v612_v5  ;;  %v580_v17 = vpack.c.bf16 %v87_v15, %v86_v14  ;;  %538 = vmatprep.mubr.f32.mxu1 %v82_v16  ;;  %v89_v19 = vld [vmem:[#allocation6 + $0x28] sm:$0xff]  ;;  %v183_v21 = vld [vmem:[#allocation8 + $0x40] sm:$0xff]  ;;  %v90_v24 = vld [vmem:[#allocation6 + $0x30] sm:$0xff]  ;;  %p782_p7 = por %p781_p6, %p780_p5 }
  0x4f   :  { %503 = vmatprep.mubr.f32.mxu0 %v82_v16  ;;  %577 = vmatprep.subr.bf16.mxu0 %v576_v13  ;;  %v184_v22 = vld [vmem:[#allocation8 + $0x48] sm:$0xff]  ;;  %v584_v23 = vpack.c.bf16 %v89_v19, %v88_v18  ;;  %v91_v25 = vld [vmem:[#allocation6 + $0x38] sm:$0xff]  ;;  %v185_v27 = vld [vmem:[#allocation8 + $0x50] sm:$0xff] }
  0x50   :  { %579 = vmatpush3.bf16.msra.mxu0 %v576_v13  ;;  %v624_v26 = vpack.c.bf16 %v184_v22, %v183_v21  ;;  %v186_v28 = vld [vmem:[#allocation8 + $0x58] sm:$0xff]  ;;  %v588_v29 = vpack.c.bf16 %v91_v25, %v90_v24  ;;  %v92_v30 = vld [vmem:[#allocation6 + $0x40] sm:$0xff]  ;;  %v93_v31 = vld [vmem:[#allocation6 + $0x48] sm:$0xff]  ;;  %p783_p8 = pnand %p782_p7, %p776_p4 }
  0x51   :  { %615 = vmatpush3.bf16.msra.mxu1 %v612_v5  ;;  %581 = vmatprep.subr.bf16.mxu0 %v580_v17  ;;  %v628_v32 = vpack.c.bf16 %v186_v28, %v185_v27  ;;  %v187_v33 = vld [vmem:[#allocation8 + $0x60] sm:$0xff]  ;;  %v188_v34 = vld [vmem:[#allocation8 + $0x68] sm:$0xff]  ;;  %v592_v35 = vpack.c.bf16 %v93_v31, %v92_v30  ;;  %v94_v36 = vld [vmem:[#allocation6 + $0x50] sm:$0xff] }
  0x52   :  { %617 = vmatprep.subr.bf16.mxu1 %v616_v9  ;;  %v95_v37 = vld [vmem:[#allocation6 + $0x58] sm:$0xff]  ;;  %v632_v38 = vpack.c.bf16 %v188_v34, %v187_v33  ;;  %v189_v39 = vld [vmem:[#allocation8 + $0x70] sm:$0xff]  ;;  %v96_v42 = vld [vmem:[#allocation6 + $0x60] sm:$0xff] }
  0x53   :  { %v190_v40 = vld [vmem:[#allocation8 + $0x78] sm:$0xff]  ;;  %v596_v41 = vpack.c.bf16 %v95_v37, %v94_v36  ;;  %v97_v43 = vld [vmem:[#allocation6 + $0x68] sm:$0xff]  ;;  %v98_v46 = vld [vmem:[#allocation6 + $0x70] sm:$0xff] }
  0x54   :  { %583 = vmatpush3.bf16.msra.mxu0 %v580_v17  ;;  %v636_v44 = vpack.c.bf16 %v190_v40, %v189_v39  ;;  %v600_v45 = vpack.c.bf16 %v97_v43, %v96_v42  ;;  %v99_v47 = vld [vmem:[#allocation6 + $0x78] sm:$0xff]  ;;  %v284_v50 = vld [vmem:[#allocation9] sm:$0xff]  ;;  %v285_v51 = vld [vmem:[#allocation9 + $0x8] sm:$0xff] }
  0x55   :  { %619 = vmatpush3.bf16.msra.mxu1 %v616_v9  ;;  %585 = vmatprep.subr.bf16.mxu0 %v584_v23  ;;  %v604_v48 = vpack.c.bf16 %v99_v47, %v98_v46  ;;  %v83_v49 = vld [vmem:[#allocation3 + $0x8] sm:$0xff]  ;;  %v640_v52 = vpack.c.bf16 %v285_v51, %v284_v50  ;;  %v286_v53 = vld [vmem:[#allocation9 + $0x10] sm:$0xff]  ;;  %v288_v56 = vld [vmem:[#allocation9 + $0x20] sm:$0xff] }
  0x56   :  { %621 = vmatprep.subr.bf16.mxu1 %v620_v20  ;;  %v287_v54 = vld [vmem:[#allocation9 + $0x18] sm:$0xff]  ;;  %v289_v57 = vld [vmem:[#allocation9 + $0x28] sm:$0xff]  ;;  %v290_v59 = vld [vmem:[#allocation9 + $0x30] sm:$0xff] }
  0x57   :  { %v644_v55 = vpack.c.bf16 %v287_v54, %v286_v53  ;;  %v648_v58 = vpack.c.bf16 %v289_v57, %v288_v56  ;;  %v291_v60 = vld [vmem:[#allocation9 + $0x38] sm:$0xff]  ;;  %v292_v62 = vld [vmem:[#allocation9 + $0x40] sm:$0xff]  ;;  %v293_v63 = vld [vmem:[#allocation9 + $0x48] sm:$0xff] }
  0x58   :  { %587 = vmatpush3.bf16.msra.mxu0 %v584_v23  ;;  %v652_v61 = vpack.c.bf16 %v291_v60, %v290_v59  ;;  %v656_v0 = vpack.c.bf16 %v293_v63, %v292_v62  ;;  %v294_v1 = vld [vmem:[#allocation9 + $0x50] sm:$0xff]  ;;  %v295_v2 = vld [vmem:[#allocation9 + $0x58] sm:$0xff]  ;;  %v296_v4 = vld [vmem:[#allocation9 + $0x60] sm:$0xff] }
  0x59   :  { %623 = vmatpush3.bf16.msra.mxu1 %v620_v20  ;;  %589 = vmatprep.subr.bf16.mxu0 %v588_v29  ;;  %v660_v3 = vpack.c.bf16 %v295_v2, %v294_v1  ;;  %v297_v5 = vld [vmem:[#allocation9 + $0x68] sm:$0xff]  ;;  %v298_v7 = vld [vmem:[#allocation9 + $0x70] sm:$0xff]  ;;  %v299_v8 = vld [vmem:[#allocation9 + $0x78] sm:$0xff] }
  0x5a   :  { %625 = vmatprep.subr.bf16.mxu1 %v624_v26  ;;  %v664_v6 = vpack.c.bf16 %v297_v5, %v296_v4  ;;  %v668_v9 = vpack.c.bf16 %v299_v8, %v298_v7 }
  0x5c   :  { %591 = vmatpush3.bf16.msra.mxu0 %v588_v29 }
  0x5d   :  { %627 = vmatpush3.bf16.msra.mxu1 %v624_v26  ;;  %593 = vmatprep.subr.bf16.mxu0 %v592_v35  ;;  %v416_v26 = vld [vmem:[%s938_s4] ss:$0 sm:$0xff] }
  0x5e   :  { %629 = vmatprep.subr.bf16.mxu1 %v628_v32 }
  0x60   :  { %595 = vmatpush3.bf16.msra.mxu0 %v592_v35 }
  0x61   :  { %631 = vmatpush3.bf16.msra.mxu1 %v628_v32  ;;  %597 = vmatprep.subr.bf16.mxu0 %v596_v41 }
  0x62   :  { %633 = vmatprep.subr.bf16.mxu1 %v632_v38 }
  0x64   :  { %599 = vmatpush3.bf16.msra.mxu0 %v596_v41 }
  0x65   :  { %635 = vmatpush3.bf16.msra.mxu1 %v632_v38  ;;  %601 = vmatprep.subr.bf16.mxu0 %v600_v45 }
  0x66   :  { %637 = vmatprep.subr.bf16.mxu1 %v636_v44 }
  0x68   :  { %603 = vmatpush3.bf16.msra.mxu0 %v600_v45 }
  0x69   :  { %639 = vmatpush3.bf16.msra.mxu1 %v636_v44  ;;  %605 = vmatprep.subr.bf16.mxu0 %v604_v48 }
  0x6c   :  { %539 = vmatmul.mubr.f32.vlgmr.msra.gmra.mrb[0].mxu1 %v83_v49  ;;  %607 = vmatpush3.bf16.msra.mxu0 %v604_v48 }
  0x6d   :  { %641 = vmatprep.subr.bf16.mxu0 %v640_v52 }
  0x6f   :  { %504 = vmatmul.mubr.f32.vlgmr.msra.gmra.mrb[0].mxu0 %v83_v49 }
  0x70   :  { %643 = vmatpush3.bf16.msra.mxu0 %v640_v52 }
  0x71   :  { %645 = vmatprep.subr.bf16.mxu0 %v644_v55 }
  0x74   :  { %647 = vmatpush3.bf16.msra.mxu0 %v644_v55 }
  0x75   :  { %649 = vmatprep.subr.bf16.mxu0 %v648_v58 }
  0x78   :  { %651 = vmatpush3.bf16.msra.mxu0 %v648_v58 }
  0x79   :  { %653 = vmatprep.subr.bf16.mxu0 %v652_v61 }
  0x7c   :  { %655 = vmatpush3.bf16.msra.mxu0 %v652_v61 }
  0x7d   :  { %657 = vmatprep.subr.bf16.mxu0 %v656_v0 }
  0x80   :  { %659 = vmatpush3.bf16.msra.mxu0 %v656_v0 }
  0x81   :  { %661 = vmatprep.subr.bf16.mxu0 %v660_v3 }
  0x84   :  { %663 = vmatpush3.bf16.msra.mxu0 %v660_v3 }
  0x85   :  { %665 = vmatprep.subr.bf16.mxu0 %v664_v6 }
  0x88   :  { %667 = vmatpush3.bf16.msra.mxu0 %v664_v6 }
  0x89   :  { %669 = vmatprep.subr.bf16.mxu0 %v668_v9 }
  0x8c   :  { %671 = vmatpush3.bf16.msra.mxu0 %v668_v9 }
 0x13f   :  { %v540_v10 = vpop.f32.mrb[0].mxu1 }
 0x140   :  { %v415_v11 = vmul.f32 -1.442695, %v540_v10  ;;  %v257_v12 = vpop.f32.mrb[1].mxu1 }
 0x141   :  { %v414_v13 = vmul.f32 -1.442695, %v257_v12 }
 0x142   :  { %679 = vpow2.f32 %v415_v11  ;;  %v505_v14 = vpop.f32.mrb[0].mxu0 }
 0x143   :  { %681 = vpow2.f32 %v414_v13  ;;  %v166_v15 = vpop.f32.mrb[1].mxu0 }
 0x14c   :  { %v680_v16 = vpop.eup %679 }
 0x14d   :  { %v682_v17 = vpop.eup %681  ;;  %v273_v18 = vadd.f32 1.0, %v680_v16 }
 0x14e   :  { %v272_v19 = vadd.f32 1.0, %v682_v17 }
 0x14f   :  { %683 = vrcp.f32 %v273_v18 }
 0x150   :  { %685 = vrcp.f32 %v272_v19 }
 0x159   :  { %v684_v20 = vpop.eup %683 }
 0x15a   :  { %v686_v21 = vpop.eup %685  ;;  %v279_v22 = vmul.f32 %v684_v20, %v540_v10 }
 0x15b   :  { %v278_v23 = vmul.f32 %v686_v21, %v257_v12 }
 0x15c   :  { %v281_v24 = vmul.f32 %v505_v14, %v279_v22 }
 0x15d   :  { %v280_v25 = vmul.f32 %v278_v23, %v166_v15 }
 0x15f   :  { %573 = vmatprep.mubr.f32.mxu0 %v280_v25 }
 0x160   :  { %574 = vmatmul.mubr.f32.vlgmr.msra.gmra.mrb[2].mxu0 %v281_v24 }
 0x233   :  { %v575_v27 = vpop.f32.mrb[2].mxu0 }
 0x234   :  { %v392_v28 = vadd.f32 %v575_v27, %v416_v26  ;;  %v366_v29 = vpop.f32.mrb[3].mxu0 }
 0x235   :  { %v391_v30 = vadd.f32 %v416_v26, %v366_v29 }
 0x236   :  { %394 = vst [vmem:[#allocation11 + $0x8] sm:$0xff] %v392_v28 }
 0x237   :  { %393 = vst [vmem:[#allocation11] sm:$0xff] %v391_v30 }
 0x238   :  { %786 = shalt.err (!%p783_p8)
}
 0x239   :  { %s787_s4 = scalar_lea.hbm %s939_s5, 256 }
 0x23a   :  { %p788_p9 = scmp.ne.s32.totalorder %s939_s5, %s787_s4  ;;  %p791_p10 = scmp.lt.u32.totalorder %s787_s4, %s939_s5 }
 0x23c   :  { %p793_p11 = pnand %p791_p10, %p788_p9 }
 0x23e   :  { %796 = shalt.err (!%p793_p11)
}
 0x23f   :  { %406 = dma.vmem_to_hbm [thread:$0]  %s401_s18, 256, %s939_s5, [#allocation5], %s807_s30, %s807_s30, %s808_s6  }
 0x240   :  { %803 = dma.done.wait [#allocation5], 256  }
 0x241   :  { %804 = vsyncadd [#allocation5], 4294967040 }
 0x242   :  { %410 = vsyncpa [#allocation4], 1 }
 0x243   :  { %411 = vsyncpa [#allocation7], 1 }
 0x244   :  { %412 = vsyncpa [#allocation10], 1 }
 0x245   :  { %413 = vsyncpa [#allocation5], 1 }

// kernel: tpu_custom_call.1
= control target key start
LH: loop header
LB: loop body
LE: loop exit
PB: predicated region body
PF: predicated region fallthrough
CT: control target
= control target key end

     0   :  { %10 = vsyncpa [#allocation4], 0  ;;  %s934_s0 = inlined_call_operand.hbm [shape: f32[16,128], index: 0, kind: input, shape index: {}]   ;;  %s935_s1 = inlined_call_operand.hbm [shape: f32[128,128], index: 1, kind: input, shape index: {}]   ;;  %s936_s2 = inlined_call_operand.hbm [shape: f32[128,128], index: 2, kind: input, shape index: {}]   ;;  %s937_s3 = inlined_call_operand.hbm [shape: f32[128,128], index: 3, kind: input, shape index: {}]   ;;  %s938_s4 = inlined_call_operand.vmem [shape: f32[1,128], index: 4, kind: input, shape index: {}]   ;;  %s939_s5 = inlined_call_operand.hbm [shape: f32[16,128], index: 5, kind: output, shape index: {}]  }
   0x1   :  { %11 = vsyncpa [#allocation7], 0 }
   0x2   :  { %12 = vsyncpa [#allocation10], 0 }
   0x3   :  { %13 = vsyncpa [#allocation5], 0  ;;  %s805_s18 = smov [#allocation6]   ;;  %s806_s20 = smov [#allocation3]  }
   0x4   :  { %s31_s19 = sshll.u32 %s805_s18, 4  ;;  %s19_s21 = sshll.u32 %s806_s20, 4  ;;  %s32_s19 = int_to_ptr.vmem [resolvable:$true] %s31_s19  ;;  %s842_s21 = int_to_ptr.vmem [resolvable:$true] %s19_s21 }
   0x5   :  { %s687_s24 = scalar_lea.hbm %s935_s1, 2048 }
   0x6   :  { %p688_p0 = scmp.ne.s32.totalorder %s935_s1, %s687_s24  ;;  %p691_p1 = scmp.lt.u32.totalorder %s687_s24, %s935_s1 }
   0x8   :  { %p693_p2 = pnand %p691_p1, %p688_p0 }
   0xa   :  { %696 = shalt.err (!%p693_p2)
}
   0xb   :  { %s697_s29 = scalar_lea.vmem %s32_s19, 2048  ;;  %p702_p4 = scmp.lt.s32.totalorder %s32_s19, %s32_s19 }
   0xc   :  { %p698_p3 = scmp.ne.s32.totalorder %s32_s19, %s697_s29  ;;  %p703_p5 = scmp.lt.s32.totalorder %s697_s29, %s697_s29 }
   0xe   :  { %p704_p6 = por %p703_p5, %p702_p4 }
  0x10   :  { %p705_p7 = pnand %p704_p6, %p698_p3 }
  0x12   :  { %708 = shalt.err (!%p705_p7)
}
  0x13   :  { %s807_s30 = smov 128   ;;  %s808_s6 = smov 8  }
  0x14   :  { %37 = dma.hbm_to_vmem [thread:$0]  %s935_s1, 2048, %s32_s19, [#allocation7], %s807_s30, %s807_s30, %s808_s6  }
  0x15   :  { %s709_s11 = scalar_lea.hbm %s934_s0, 256 }
  0x16   :  { %p710_p8 = scmp.ne.s32.totalorder %s934_s0, %s709_s11  ;;  %p713_p9 = scmp.lt.u32.totalorder %s709_s11, %s934_s0 }
  0x18   :  { %p715_p10 = pnand %p713_p9, %p710_p8 }
  0x1a   :  { %718 = shalt.err (!%p715_p10)
}
  0x1b   :  { %s719_s16 = scalar_lea.vmem %s842_s21, 256  ;;  %p724_p12 = scmp.lt.s32.totalorder %s842_s21, %s842_s21 }
  0x1c   :  { %p720_p11 = scmp.ne.s32.totalorder %s842_s21, %s719_s16  ;;  %p725_p13 = scmp.lt.s32.totalorder %s719_s16, %s719_s16 }
  0x1e   :  { %p726_p0 = por %p725_p13, %p724_p12 }
  0x20   :  { %p727_p1 = pnand %p726_p0, %p720_p11 }
  0x22   :  { %730 = shalt.err (!%p727_p1)
}
  0x23   :  { %25 = dma.hbm_to_vmem [thread:$0]  %s934_s0, 256, %s842_s21, [#allocation4], %s807_s30, %s807_s30, %s808_s6  }
  0x24   :  { %s809_s18 = smov [#allocation8]   ;;  %s810_s20 = smov [#allocation9]  }
  0x25   :  { %s43_s19 = sshll.u32 %s809_s18, 4  ;;  %s55_s22 = sshll.u32 %s810_s20, 4  ;;  %s44_s19 = int_to_ptr.vmem [resolvable:$true] %s43_s19  ;;  %s879_s22 = int_to_ptr.vmem [resolvable:$true] %s55_s22 }
  0x26   :  { %s731_s25 = scalar_lea.hbm %s936_s2, 2048 }
  0x27   :  { %p732_p2 = scmp.ne.s32.totalorder %s936_s2, %s731_s25  ;;  %p735_p3 = scmp.lt.u32.totalorder %s731_s25, %s936_s2 }
  0x29   :  { %p737_p4 = pnand %p735_p3, %p732_p2 }
  0x2b   :  { %740 = shalt.err (!%p737_p4)
}
  0x2c   :  { %s741_s0 = scalar_lea.vmem %s44_s19, 2048  ;;  %p746_p6 = scmp.lt.s32.totalorder %s44_s19, %s44_s19 }
  0x2d   :  { %p742_p5 = scmp.ne.s32.totalorder %s44_s19, %s741_s0  ;;  %p747_p7 = scmp.lt.s32.totalorder %s741_s0, %s741_s0 }
  0x2f   :  { %p748_p8 = por %p747_p7, %p746_p6 }
  0x31   :  { %p749_p9 = pnand %p748_p8, %p742_p5 }
  0x33   :  { %752 = shalt.err (!%p749_p9)
}
  0x34   :  { %49 = dma.hbm_to_vmem [thread:$0]  %s936_s2, 2048, %s44_s19, [#allocation7], %s807_s30, %s807_s30, %s808_s6  }
  0x35   :  { %s753_s10 = scalar_lea.hbm %s937_s3, 2048 }
  0x36   :  { %p754_p10 = scmp.ne.s32.totalorder %s937_s3, %s753_s10  ;;  %p757_p11 = scmp.lt.u32.totalorder %s753_s10, %s937_s3 }
  0x38   :  { %p759_p12 = pnand %p757_p11, %p754_p10 }
  0x3a   :  { %762 = shalt.err (!%p759_p12)
}
  0x3b   :  { %s763_s15 = scalar_lea.vmem %s879_s22, 2048  ;;  %p768_p0 = scmp.lt.s32.totalorder %s879_s22, %s879_s22 }
  0x3c   :  { %p764_p13 = scmp.ne.s32.totalorder %s879_s22, %s763_s15  ;;  %p769_p1 = scmp.lt.s32.totalorder %s763_s15, %s763_s15 }
  0x3e   :  { %p770_p2 = por %p769_p1, %p768_p0 }
  0x40   :  { %p771_p3 = pnand %p770_p2, %p764_p13 }
  0x42   :  { %774 = shalt.err (!%p771_p3)
}
  0x43   :  { %61 = dma.hbm_to_vmem [thread:$0]  %s937_s3, 2048, %s879_s22, [#allocation10], %s807_s30, %s807_s30, %s808_s6  }
  0x44   :  { %797 = dma.done.wait [#allocation4], 256  }
  0x45   :  { %798 = vsyncadd [#allocation4], 4294967040 }
  0x46   :  { %799 = dma.done.wait [#allocation7], 4096  }
  0x47   :  { %800 = vsyncadd [#allocation7], 4294963200 }
  0x48   :  { %801 = dma.done.wait [#allocation10], 2048  }
  0x49   :  { %802 = vsyncadd [#allocation10], 4294965248  ;;  %v175_v0 = vld [vmem:[#allocation8] sm:$0xff]  ;;  %v176_v1 = vld [vmem:[#allocation8 + $0x8] sm:$0xff]  ;;  %s811_s17 = smov [#allocation11]  }
  0x4a   :  { %v177_v2 = vld [vmem:[#allocation8 + $0x10] sm:$0xff]  ;;  %v608_v3 = vpack.c.bf16 %v176_v1, %v175_v0  ;;  %v178_v4 = vld [vmem:[#allocation8 + $0x18] sm:$0xff]  ;;  %v179_v6 = vld [vmem:[#allocation8 + $0x20] sm:$0xff]  ;;  %s400_s18 = sshll.u32 %s811_s17, 4  ;;  %s401_s18 = int_to_ptr.vmem [resolvable:$true] %s400_s18 }
  0x4b   :  { %v612_v5 = vpack.c.bf16 %v178_v4, %v177_v2  ;;  %v180_v7 = vld [vmem:[#allocation8 + $0x28] sm:$0xff]  ;;  %v84_v8 = vld [vmem:[#allocation6] sm:$0xff]  ;;  %v181_v10 = vld [vmem:[#allocation8 + $0x30] sm:$0xff]  ;;  %s775_s19 = scalar_lea.vmem %s401_s18, 256  ;;  %p780_p5 = scmp.lt.s32.totalorder %s401_s18, %s401_s18 }
  0x4c   :  { %609 = vmatprep.subr.bf16.mxu1 %v608_v3  ;;  %v616_v9 = vpack.c.bf16 %v180_v7, %v179_v6  ;;  %v182_v11 = vld [vmem:[#allocation8 + $0x38] sm:$0xff]  ;;  %v85_v12 = vld [vmem:[#allocation6 + $0x8] sm:$0xff]  ;;  %v86_v14 = vld [vmem:[#allocation6 + $0x10] sm:$0xff]  ;;  %p776_p4 = scmp.ne.s32.totalorder %s401_s18, %s775_s19  ;;  %p781_p6 = scmp.lt.s32.totalorder %s775_s19, %s775_s19 }
  0x4d   :  { %611 = vmatpush3.bf16.msra.mxu1 %v608_v3  ;;  %v576_v13 = vpack.c.bf16 %v85_v12, %v84_v8  ;;  %v87_v15 = vld [vmem:[#allocation6 + $0x18] sm:$0xff]  ;;  %v82_v16 = vld [vmem:[#allocation3] sm:$0xff]  ;;  %v88_v18 = vld [vmem:[#allocation6 + $0x20] sm:$0xff]  ;;  %v620_v20 = vpack.c.bf16 %v182_v11, %v181_v10 }
  0x4e   :  { %613 = vmatprep.subr.bf16.mxu1 %v612_v5  ;;  %v580_v17 = vpack.c.bf16 %v87_v15, %v86_v14  ;;  %538 = vmatprep.mubr.f32.mxu1 %v82_v16  ;;  %v89_v19 = vld [vmem:[#allocation6 + $0x28] sm:$0xff]  ;;  %v183_v21 = vld [vmem:[#allocation8 + $0x40] sm:$0xff]  ;;  %v90_v24 = vld [vmem:[#allocation6 + $0x30] sm:$0xff]  ;;  %p782_p7 = por %p781_p6, %p780_p5 }
  0x4f   :  { %503 = vmatprep.mubr.f32.mxu0 %v82_v16  ;;  %577 = vmatprep.subr.bf16.mxu0 %v576_v13  ;;  %v184_v22 = vld [vmem:[#allocation8 + $0x48] sm:$0xff]  ;;  %v584_v23 = vpack.c.bf16 %v89_v19, %v88_v18  ;;  %v91_v25 = vld [vmem:[#allocation6 + $0x38] sm:$0xff]  ;;  %v185_v27 = vld [vmem:[#allocation8 + $0x50] sm:$0xff] }
  0x50   :  { %579 = vmatpush3.bf16.msra.mxu0 %v576_v13  ;;  %v624_v26 = vpack.c.bf16 %v184_v22, %v183_v21  ;;  %v186_v28 = vld [vmem:[#allocation8 + $0x58] sm:$0xff]  ;;  %v588_v29 = vpack.c.bf16 %v91_v25, %v90_v24  ;;  %v92_v30 = vld [vmem:[#allocation6 + $0x40] sm:$0xff]  ;;  %v93_v31 = vld [vmem:[#allocation6 + $0x48] sm:$0xff]  ;;  %p783_p8 = pnand %p782_p7, %p776_p4 }
  0x51   :  { %615 = vmatpush3.bf16.msra.mxu1 %v612_v5  ;;  %581 = vmatprep.subr.bf16.mxu0 %v580_v17  ;;  %v628_v32 = vpack.c.bf16 %v186_v28, %v185_v27  ;;  %v187_v33 = vld [vmem:[#allocation8 + $0x60] sm:$0xff]  ;;  %v188_v34 = vld [vmem:[#allocation8 + $0x68] sm:$0xff]  ;;  %v592_v35 = vpack.c.bf16 %v93_v31, %v92_v30  ;;  %v94_v36 = vld [vmem:[#allocation6 + $0x50] sm:$0xff] }
  0x52   :  { %617 = vmatprep.subr.bf16.mxu1 %v616_v9  ;;  %v95_v37 = vld [vmem:[#allocation6 + $0x58] sm:$0xff]  ;;  %v632_v38 = vpack.c.bf16 %v188_v34, %v187_v33  ;;  %v189_v39 = vld [vmem:[#allocation8 + $0x70] sm:$0xff]  ;;  %v96_v42 = vld [vmem:[#allocation6 + $0x60] sm:$0xff] }
  0x53   :  { %v190_v40 = vld [vmem:[#allocation8 + $0x78] sm:$0xff]  ;;  %v596_v41 = vpack.c.bf16 %v95_v37, %v94_v36  ;;  %v97_v43 = vld [vmem:[#allocation6 + $0x68] sm:$0xff]  ;;  %v98_v46 = vld [vmem:[#allocation6 + $0x70] sm:$0xff] }
  0x54   :  { %583 = vmatpush3.bf16.msra.mxu0 %v580_v17  ;;  %v636_v44 = vpack.c.bf16 %v190_v40, %v189_v39  ;;  %v600_v45 = vpack.c.bf16 %v97_v43, %v96_v42  ;;  %v99_v47 = vld [vmem:[#allocation6 + $0x78] sm:$0xff]  ;;  %v284_v50 = vld [vmem:[#allocation9] sm:$0xff]  ;;  %v285_v51 = vld [vmem:[#allocation9 + $0x8] sm:$0xff] }
  0x55   :  { %619 = vmatpush3.bf16.msra.mxu1 %v616_v9  ;;  %585 = vmatprep.subr.bf16.mxu0 %v584_v23  ;;  %v604_v48 = vpack.c.bf16 %v99_v47, %v98_v46  ;;  %v83_v49 = vld [vmem:[#allocation3 + $0x8] sm:$0xff]  ;;  %v640_v52 = vpack.c.bf16 %v285_v51, %v284_v50  ;;  %v286_v53 = vld [vmem:[#allocation9 + $0x10] sm:$0xff]  ;;  %v288_v56 = vld [vmem:[#allocation9 + $0x20] sm:$0xff] }
  0x56   :  { %621 = vmatprep.subr.bf16.mxu1 %v620_v20  ;;  %v287_v54 = vld [vmem:[#allocation9 + $0x18] sm:$0xff]  ;;  %v289_v57 = vld [vmem:[#allocation9 + $0x28] sm:$0xff]  ;;  %v290_v59 = vld [vmem:[#allocation9 + $0x30] sm:$0xff] }
  0x57   :  { %v644_v55 = vpack.c.bf16 %v287_v54, %v286_v53  ;;  %v648_v58 = vpack.c.bf16 %v289_v57, %v288_v56  ;;  %v291_v60 = vld [vmem:[#allocation9 + $0x38] sm:$0xff]  ;;  %v292_v62 = vld [vmem:[#allocation9 + $0x40] sm:$0xff]  ;;  %v293_v63 = vld [vmem:[#allocation9 + $0x48] sm:$0xff] }
  0x58   :  { %587 = vmatpush3.bf16.msra.mxu0 %v584_v23  ;;  %v652_v61 = vpack.c.bf16 %v291_v60, %v290_v59  ;;  %v656_v0 = vpack.c.bf16 %v293_v63, %v292_v62  ;;  %v294_v1 = vld [vmem:[#allocation9 + $0x50] sm:$0xff]  ;;  %v295_v2 = vld [vmem:[#allocation9 + $0x58] sm:$0xff]  ;;  %v296_v4 = vld [vmem:[#allocation9 + $0x60] sm:$0xff] }
  0x59   :  { %623 = vmatpush3.bf16.msra.mxu1 %v620_v20  ;;  %589 = vmatprep.subr.bf16.mxu0 %v588_v29  ;;  %v660_v3 = vpack.c.bf16 %v295_v2, %v294_v1  ;;  %v297_v5 = vld [vmem:[#allocation9 + $0x68] sm:$0xff]  ;;  %v298_v7 = vld [vmem:[#allocation9 + $0x70] sm:$0xff]  ;;  %v299_v8 = vld [vmem:[#allocation9 + $0x78] sm:$0xff] }
  0x5a   :  { %625 = vmatprep.subr.bf16.mxu1 %v624_v26  ;;  %v664_v6 = vpack.c.bf16 %v297_v5, %v296_v4  ;;  %v668_v9 = vpack.c.bf16 %v299_v8, %v298_v7 }
  0x5c   :  { %591 = vmatpush3.bf16.msra.mxu0 %v588_v29 }
  0x5d   :  { %627 = vmatpush3.bf16.msra.mxu1 %v624_v26  ;;  %593 = vmatprep.subr.bf16.mxu0 %v592_v35  ;;  %v416_v26 = vld [vmem:[%s938_s4] ss:$0 sm:$0xff] }
  0x5e   :  { %629 = vmatprep.subr.bf16.mxu1 %v628_v32 }
  0x60   :  { %595 = vmatpush3.bf16.msra.mxu0 %v592_v35 }
  0x61   :  { %631 = vmatpush3.bf16.msra.mxu1 %v628_v32  ;;  %597 = vmatprep.subr.bf16.mxu0 %v596_v41 }
  0x62   :  { %633 = vmatprep.subr.bf16.mxu1 %v632_v38 }
  0x64   :  { %599 = vmatpush3.bf16.msra.mxu0 %v596_v41 }
  0x65   :  { %635 = vmatpush3.bf16.msra.mxu1 %v632_v38  ;;  %601 = vmatprep.subr.bf16.mxu0 %v600_v45 }
  0x66   :  { %637 = vmatprep.subr.bf16.mxu1 %v636_v44 }
  0x68   :  { %603 = vmatpush3.bf16.msra.mxu0 %v600_v45 }
  0x69   :  { %639 = vmatpush3.bf16.msra.mxu1 %v636_v44  ;;  %605 = vmatprep.subr.bf16.mxu0 %v604_v48 }
  0x6c   :  { %539 = vmatmul.mubr.f32.vlgmr.msra.gmra.mrb[0].mxu1 %v83_v49  ;;  %607 = vmatpush3.bf16.msra.mxu0 %v604_v48 }
  0x6d   :  { %641 = vmatprep.subr.bf16.mxu0 %v640_v52 }
  0x6f   :  { %504 = vmatmul.mubr.f32.vlgmr.msra.gmra.mrb[0].mxu0 %v83_v49 }
  0x70   :  { %643 = vmatpush3.bf16.msra.mxu0 %v640_v52 }
  0x71   :  { %645 = vmatprep.subr.bf16.mxu0 %v644_v55 }
  0x74   :  { %647 = vmatpush3.bf16.msra.mxu0 %v644_v55 }
  0x75   :  { %649 = vmatprep.subr.bf16.mxu0 %v648_v58 }
  0x78   :  { %651 = vmatpush3.bf16.msra.mxu0 %v648_v58 }
  0x79   :  { %653 = vmatprep.subr.bf16.mxu0 %v652_v61 }
  0x7c   :  { %655 = vmatpush3.bf16.msra.mxu0 %v652_v61 }
  0x7d   :  { %657 = vmatprep.subr.bf16.mxu0 %v656_v0 }
  0x80   :  { %659 = vmatpush3.bf16.msra.mxu0 %v656_v0 }
  0x81   :  { %661 = vmatprep.subr.bf16.mxu0 %v660_v3 }
  0x84   :  { %663 = vmatpush3.bf16.msra.mxu0 %v660_v3 }
  0x85   :  { %665 = vmatprep.subr.bf16.mxu0 %v664_v6 }
  0x88   :  { %667 = vmatpush3.bf16.msra.mxu0 %v664_v6 }
  0x89   :  { %669 = vmatprep.subr.bf16.mxu0 %v668_v9 }
  0x8c   :  { %671 = vmatpush3.bf16.msra.mxu0 %v668_v9 }
 0x13f   :  { %v540_v10 = vpop.f32.mrb[0].mxu1 }
 0x140   :  { %v415_v11 = vmul.f32 -1.442695, %v540_v10  ;;  %v257_v12 = vpop.f32.mrb[1].mxu1 }
 0x141   :  { %v414_v13 = vmul.f32 -1.442695, %v257_v12 }
 0x142   :  { %679 = vpow2.f32 %v415_v11  ;;  %v505_v14 = vpop.f32.mrb[0].mxu0 }
 0x143   :  { %681 = vpow2.f32 %v414_v13  ;;  %v166_v15 = vpop.f32.mrb[1].mxu0 }
 0x14c   :  { %v680_v16 = vpop.eup %679 }
 0x14d   :  { %v682_v17 = vpop.eup %681  ;;  %v273_v18 = vadd.f32 1.0, %v680_v16 }
 0x14e   :  { %v272_v19 = vadd.f32 1.0, %v682_v17 }
 0x14f   :  { %683 = vrcp.f32 %v273_v18 }
 0x150   :  { %685 = vrcp.f32 %v272_v19 }
 0x159   :  { %v684_v20 = vpop.eup %683 }
 0x15a   :  { %v686_v21 = vpop.eup %685  ;;  %v279_v22 = vmul.f32 %v684_v20, %v540_v10 }
 0x15b   :  { %v278_v23 = vmul.f32 %v686_v21, %v257_v12 }
 0x15c   :  { %v281_v24 = vmul.f32 %v505_v14, %v279_v22 }
 0x15d   :  { %v280_v25 = vmul.f32 %v278_v23, %v166_v15 }
 0x15f   :  { %573 = vmatprep.mubr.f32.mxu0 %v280_v25 }
 0x160   :  { %574 = vmatmul.mubr.f32.vlgmr.msra.gmra.mrb[2].mxu0 %v281_v24 }
 0x233   :  { %v575_v27 = vpop.f32.mrb[2].mxu0 }
 0x234   :  { %v392_v28 = vadd.f32 %v575_v27, %v416_v26  ;;  %v366_v29 = vpop.f32.mrb[3].mxu0 }
 0x235   :  { %v391_v30 = vadd.f32 %v416_v26, %v366_v29 }
 0x236   :  { %394 = vst [vmem:[#allocation11 + $0x8] sm:$0xff] %v392_v28 }
 0x237   :  { %393 = vst [vmem:[#allocation11] sm:$0xff] %v391_v30 }
 0x238   :  { %786 = shalt.err (!%p783_p8)
}
 0x239   :  { %s787_s4 = scalar_lea.hbm %s939_s5, 256 }
 0x23a   :  { %p788_p9 = scmp.ne.s32.totalorder %s939_s5, %s787_s4  ;;  %p791_p10 = scmp.lt.u32.totalorder %s787_s4, %s939_s5 }
 0x23c   :  { %p793_p11 = pnand %p791_p10, %p788_p9 }
 0x23e   :  { %796 = shalt.err (!%p793_p11)
}
 0x23f   :  { %406 = dma.vmem_to_hbm [thread:$0]  %s401_s18, 256, %s939_s5, [#allocation5], %s807_s30, %s807_s30, %s808_s6  }
 0x240   :  { %803 = dma.done.wait [#allocation5], 256  }
 0x241   :  { %804 = vsyncadd [#allocation5], 4294967040 }
 0x242   :  { %410 = vsyncpa [#allocation4], 1 }
 0x243   :  { %411 = vsyncpa [#allocation7], 1 }
 0x244   :  { %412 = vsyncpa [#allocation10], 1 }
 0x245   :  { %413 = vsyncpa [#allocation5], 1 }

</bundles_post_ra>
